<compile_context>
chip_gen: v7x
topology: tpu7x:2x2x1
jax: 0.10.0
libtpu: 0.0.40
codegen_flags: <defaults>
</compile_context>

<pallas_src>
import functools

import jax
import jax.numpy as jnp
from jax.experimental import pallas as pl
from jax.experimental.pallas import tpu as pltpu


def _round_up(x, m):
    return (x + m - 1) // m * m


def _linear_gelu_kernel(x_ref, w_ref, b_ref, o_ref, *, approximate):
    # x_ref: (TM, K)  w_ref: (K, Npad)  b_ref: (1, Npad)  o_ref: (TM, Npad)
    acc = jnp.dot(x_ref[...], w_ref[...], preferred_element_type=jnp.float32)
    acc = acc + b_ref[...].astype(jnp.float32)
    if approximate:
        # tanh-based GELU: transcendental goes to the EUP slot (free filler if
        # the kernel ever becomes VALU-bound). Not bit-identical to torch GELU.
        c = jnp.float32(0.7978845608028654)  # sqrt(2/pi)
        inner = c * (acc + jnp.float32(0.044715) * acc * acc * acc)
        gelu = 0.5 * acc * (1.0 + jnp.tanh(inner))
    else:
        # Exact (erf-based) GELU, matching torch.nn.GELU() default.
        inv_sqrt2 = jnp.float32(0.7071067811865476)
        gelu = 0.5 * acc * (1.0 + jax.lax.erf(acc * inv_sqrt2))
    o_ref[...] = gelu.astype(o_ref.dtype)


@functools.partial(jax.jit, static_argnames=("tile_m", "approximate_gelu"))
def feature_agg2_forward(x, w, b, *, tile_m=256, approximate_gelu=False):
    """GELU(x @ w + b) with the hot path inside a Pallas kernel.

    x: (..., input_size)   w: (input_size, output_size)   b: (output_size,)
    """
    in_size, out_size = w.shape
    lead_shape = x.shape[:-1]
    x2d = x.reshape(-1, in_size)
    m = x2d.shape[0]
    itemsize = jnp.dtype(x.dtype).itemsize

    # ---- Lane-dense output: pad N up to a multiple of 128 (zero columns). ----
    n_padded = _round_up(out_size, 128)
    if n_padded != out_size:
        w_p = jnp.pad(w, ((0, 0), (0, n_padded - out_size)))
        b_p = jnp.pad(b, (0, n_padded - out_size))
    else:
        w_p, b_p = w, b
    b2d = b_p.reshape(1, n_padded)

    # ---- Pick the M tile: big by default, shrink only if VMEM budget says so.
    m8 = _round_up(max(m, 1), 8)
    tm = min(_round_up(tile_m, 8), m8)

    def working_set_bytes(t):
        # double-buffered x and out tiles + resident weight/bias (count 2x to
        # be safe w.r.t. how the pipeline allocates constant-index operands).
        return (2 * t * in_size + 2 * t * n_padded
                + 2 * in_size * n_padded + 2 * n_padded) * itemsize

    vmem_budget = 40 * 1024 * 1024  # conservative: fits v7x's 64 MiB with room
    while tm > 8 and working_set_bytes(tm) > vmem_budget:
        tm = _round_up(tm // 2, 8)

    grid_len = pl.cdiv(m, tm)
    m_pad = grid_len * tm
    x_p = jnp.pad(x2d, ((0, m_pad - m), (0, 0))) if m_pad != m else x2d

    kernel = functools.partial(_linear_gelu_kernel, approximate=approximate_gelu)

    cost = pl.CostEstimate(
        flops=2 * m_pad * in_size * n_padded,
        transcendentals=m_pad * n_padded,
        bytes_accessed=itemsize * (m_pad * in_size + in_size * n_padded
                                   + m_pad * n_padded),
    )

    if grid_len == 1:
        # Small-problem fast path: single VMEM-resident invocation, no grid /
        # software-pipelining machinery at all.
        out2d = pl.pallas_call(
            kernel,
            out_shape=jax.ShapeDtypeStruct((m_pad, n_padded), x.dtype),
            in_specs=[
                pl.BlockSpec(memory_space=pltpu.MemorySpace.VMEM),
                pl.BlockSpec(memory_space=pltpu.MemorySpace.VMEM),
                pl.BlockSpec(memory_space=pltpu.MemorySpace.VMEM),
            ],
            out_specs=pl.BlockSpec(memory_space=pltpu.MemorySpace.VMEM),
            compiler_params=pltpu.CompilerParams(
                vmem_limit_bytes=64 * 1024 * 1024,
            ),
            cost_estimate=cost,
        )(x_p, w_p, b2d)
    else:
        out2d = pl.pallas_call(
            kernel,
            out_shape=jax.ShapeDtypeStruct((m_pad, n_padded), x.dtype),
            grid_spec=pltpu.PrefetchScalarGridSpec(
                num_scalar_prefetch=0,
                grid=(grid_len,),
                in_specs=[
                    pl.BlockSpec((tm, in_size), lambda i: (i, 0)),
                    pl.BlockSpec((in_size, n_padded), lambda i: (0, 0)),
                    pl.BlockSpec((1, n_padded), lambda i: (0, 0)),
                ],
                out_specs=pl.BlockSpec((tm, n_padded), lambda i: (i, 0)),
            ),
            compiler_params=pltpu.CompilerParams(
                dimension_semantics=("parallel",),
                vmem_limit_bytes=64 * 1024 * 1024,
            ),
            cost_estimate=cost,
        )(x_p, w_p, b2d)

    out2d = out2d[:m, :out_size]
    return out2d.reshape(*lead_shape, out_size)


def init_params(key, input_size, output_size, dtype=jnp.float32):
    """Deterministic init mimicking nn.Linear default (uniform +/- 1/sqrt(fan_in))."""
    kw, kb = jax.random.split(key)
    bound = 1.0 / (input_size ** 0.5)
    w = jax.random.uniform(kw, (input_size, output_size), dtype, -bound, bound)
    b = jax.random.uniform(kb, (output_size,), dtype, -bound, bound)
    return w, b


if __name__ == "__main__":
    key = jax.random.PRNGKey(0)
    k_x1, k_x2, k_p = jax.random.split(key, 3)

    input_size, output_size = 32, 64
    w, b = init_params(k_p, input_size, output_size)

    # Case 1: small input (batch=2, nodes=16) -> fast path (single VMEM tile).
    x1 = jax.random.normal(k_x1, (2, 16, input_size), dtype=jnp.float32)
    out1 = feature_agg2_forward(x1, w, b)
    jax.block_until_ready(out1)
    ref1 = jax.nn.gelu(x1 @ w + b, approximate=False)
    assert out1.shape == (2, 16, output_size)
    assert jnp.allclose(out1, ref1, atol=1e-5, rtol=1e-5)

    # Case 2: larger flattened M (4*130 = 520, not a multiple of tile_m) ->
    # gridded path with M padding and a ragged final tile.
    x2 = jax.random.normal(k_x2, (4, 130, input_size), dtype=jnp.float32)
    out2 = feature_agg2_forward(x2, w, b, tile_m=256)
    jax.block_until_ready(out2)
    ref2 = jax.nn.gelu(x2 @ w + b, approximate=False)
    assert out2.shape == (4, 130, output_size)
    assert jnp.allclose(out2, ref2, atol=1e-5, rtol=1e-5)

    print("KERNEL_OK")
</pallas_src>

<mosaic_0001>
module attributes {stable_mosaic.version = 11 : i64} {
  func.func @_linear_gelu_kernel(%arg0: memref<32x32xf32, #tpu.memory_space<vmem>>, %arg1: memref<32x128xf32, #tpu.memory_space<vmem>>, %arg2: memref<1x128xf32, #tpu.memory_space<vmem>>, %arg3: memref<32x128xf32, #tpu.memory_space<vmem>>) attributes {dimension_semantics = [], scalar_prefetch = 0 : i64, scratch_operands = 0 : i64, tpu.core_type = #tpu.core_type<tc>} {
    %c0 = arith.constant 0 : index
    %c0_0 = arith.constant 0 : index
    %0 = vector.load %arg0[%c0, %c0_0] : memref<32x32xf32, #tpu.memory_space<vmem>>, vector<32x32xf32>
    %c0_1 = arith.constant 0 : index
    %c0_2 = arith.constant 0 : index
    %1 = vector.load %arg1[%c0_1, %c0_2] : memref<32x128xf32, #tpu.memory_space<vmem>>, vector<32x128xf32>
    %cst = arith.constant dense<0.000000e+00> : vector<32x128xf32>
    %2 = tpu.matmul %0, %1, %cst {dimension_numbers = #tpu.dot_dimension_numbers<[1], [0], [0], [1], [0, 0, 1, 1], [], []>} : vector<32x32xf32>, vector<32x128xf32>, vector<32x128xf32> -> vector<32x128xf32>
    %c0_3 = arith.constant 0 : index
    %c0_4 = arith.constant 0 : index
    %3 = vector.load %arg2[%c0_3, %c0_4] : memref<1x128xf32, #tpu.memory_space<vmem>>, vector<1x128xf32>
    %4 = vector.broadcast %3 : vector<1x128xf32> to vector<32x128xf32>
    %5 = arith.addf %2, %4 : vector<32x128xf32>
    %cst_5 = arith.constant 5.000000e-01 : f32
    %6 = vector.broadcast %cst_5 : f32 to vector<32x128xf32>
    %7 = arith.mulf %6, %5 : vector<32x128xf32>
    %cst_6 = arith.constant 0.707106769 : f32
    %8 = vector.broadcast %cst_6 : f32 to vector<32x128xf32>
    %9 = arith.mulf %5, %8 : vector<32x128xf32>
    %10 = math.erf %9 : vector<32x128xf32>
    %cst_7 = arith.constant 1.000000e+00 : f32
    %11 = vector.broadcast %cst_7 : f32 to vector<32x128xf32>
    %12 = arith.addf %11, %10 : vector<32x128xf32>
    %13 = arith.mulf %7, %12 : vector<32x128xf32>
    %c0_8 = arith.constant 0 : index
    %c0_9 = arith.constant 0 : index
    %14 = vector.load %arg3[%c0_8, %c0_9] : memref<32x128xf32, #tpu.memory_space<vmem>>, vector<32x128xf32>
    tpu.vector_store %arg3[%c0_8, %c0_9], %13 {strides = array<i32>} : memref<32x128xf32, #tpu.memory_space<vmem>>, vector<32x128xf32>,
    return
  }
}

</mosaic_0001>

<bundles_post_ra>
// kernel: feature_agg2_forward.1
= control target key start
LH: loop header
LB: loop body
LE: loop exit
PB: predicated region body
PF: predicated region fallthrough
CT: control target
= control target key end

     0   :  { %8 = vsyncpa [#allocation3], 0  ;;  %s450_s0 = inlined_call_operand.hbm [shape: f32[32,32], index: 0, kind: input, shape index: {}]   ;;  %s451_s1 = inlined_call_operand.hbm [shape: f32[32,128], index: 1, kind: input, shape index: {}]   ;;  %s452_s2 = inlined_call_operand.hbm [shape: f32[1,128], index: 2, kind: input, shape index: {}]   ;;  %s453_s3 = inlined_call_operand.hbm [shape: f32[32,128], index: 3, kind: output, shape index: {}]  }
   0x1   :  { %9 = vsyncpa [#allocation6], 0 }
   0x2   :  { %10 = vsyncpa [#allocation4], 0  ;;  %s356_s12 = smov [#allocation5]   ;;  %s357_s14 = smov [#allocation2]  }
   0x3   :  { %s28_s13 = sshll.u32 %s356_s12, 4  ;;  %s16_s15 = sshll.u32 %s357_s14, 4  ;;  %s29_s13 = int_to_ptr.vmem [resolvable:$true] %s28_s13  ;;  %s382_s15 = int_to_ptr.vmem [resolvable:$true] %s16_s15 }
   0x4   :  { %s262_s18 = scalar_lea.hbm %s451_s1, 512 }
   0x5   :  { %p263_p0 = scmp.ne.s32.totalorder %s451_s1, %s262_s18  ;;  %p266_p1 = scmp.lt.u32.totalorder %s262_s18, %s451_s1 }
   0x7   :  { %p268_p2 = pnand %p266_p1, %p263_p0 }
   0x9   :  { %271 = shalt.err (!%p268_p2)
}
   0xa   :  { %s272_s23 = scalar_lea.vmem %s29_s13, 512  ;;  %p277_p4 = scmp.lt.s32.totalorder %s29_s13, %s29_s13 }
   0xb   :  { %p273_p3 = scmp.ne.s32.totalorder %s29_s13, %s272_s23  ;;  %p278_p5 = scmp.lt.s32.totalorder %s272_s23, %s272_s23 }
   0xd   :  { %p279_p6 = por %p278_p5, %p277_p4 }
   0xf   :  { %p280_p7 = pnand %p279_p6, %p273_p3 }
  0x11   :  { %283 = shalt.err (!%p280_p7)
}
  0x12   :  { %s358_s24 = smov 128   ;;  %s359_s25 = smov 8  }
  0x13   :  { %34 = dma.hbm_to_vmem [thread:$0]  %s451_s1, 512, %s29_s13, [#allocation6], %s358_s24, %s358_s24, %s359_s25  }
  0x14   :  { %s284_s30 = scalar_lea.hbm %s450_s0, 512 }
  0x15   :  { %p285_p8 = scmp.ne.s32.totalorder %s450_s0, %s284_s30  ;;  %p288_p9 = scmp.lt.u32.totalorder %s284_s30, %s450_s0 }
  0x17   :  { %p290_p10 = pnand %p288_p9, %p285_p8 }
  0x19   :  { %293 = shalt.err (!%p290_p10)
}
  0x1a   :  { %s294_s8 = scalar_lea.vmem %s382_s15, 512  ;;  %p299_p12 = scmp.lt.s32.totalorder %s382_s15, %s382_s15 }
  0x1b   :  { %p295_p11 = scmp.ne.s32.totalorder %s382_s15, %s294_s8  ;;  %p300_p13 = scmp.lt.s32.totalorder %s294_s8, %s294_s8 }
  0x1d   :  { %p301_p0 = por %p300_p13, %p299_p12 }
  0x1f   :  { %p302_p1 = pnand %p301_p0, %p295_p11 }
  0x21   :  { %305 = shalt.err (!%p302_p1)
}
  0x22   :  { %22 = dma.hbm_to_vmem [thread:$0]  %s450_s0, 512, %s382_s15, [#allocation3], %s358_s24, %s358_s24, %s359_s25  }
  0x23   :  { %s360_s10 = smov [#allocation7]   ;;  %s306_s14 = scalar_lea.hbm %s452_s2, 16 }
  0x24   :  { %s41_s11 = sshll.u32 %s360_s10, 4  ;;  %p307_p2 = scmp.ne.s32.totalorder %s452_s2, %s306_s14  ;;  %s42_s11 = int_to_ptr.vmem [resolvable:$true] %s41_s11 }
  0x25   :  { %p310_p3 = scmp.lt.u32.totalorder %s306_s14, %s452_s2 }
  0x27   :  { %p312_p4 = pnand %p310_p3, %p307_p2 }
  0x29   :  { %315 = shalt.err (!%p312_p4)
}
  0x2a   :  { %s316_s20 = scalar_lea.vmem %s42_s11, 16  ;;  %s320_s0 = scalar_lea.vmem %s42_s11, 32 }
  0x2b   :  { %p317_p5 = scmp.ne.s32.totalorder %s42_s11, %s316_s20  ;;  %p321_p6 = scmp.lt.s32.totalorder %s42_s11, %s42_s11 }
  0x2c   :  { %p322_p7 = scmp.lt.s32.totalorder %s320_s0, %s316_s20 }
  0x2e   :  { %p323_p8 = por %p322_p7, %p321_p6 }
  0x30   :  { %p324_p9 = pnand %p323_p8, %p317_p5 }
  0x32   :  { %327 = shalt.err (!%p324_p9)
}
  0x33   :  { %44 = dma.hbm_to_vmem [thread:$0]  %s452_s2, 16, %s42_s11, [#allocation6]  }
  0x34   :  { %350 = dma.done.wait [#allocation3], 512  }
  0x35   :  { %351 = vsyncadd [#allocation3], 4294966784 }
  0x36   :  { %352 = dma.done.wait [#allocation6], 528  }
  0x37   :  { %353 = vsyncadd [#allocation6], 4294966768  ;;  %vm69_vm0 = vcmask 261120   ;;  %v58_v0 = vld [vmem:[#allocation5] sm:$0xff]  ;;  %v59_v1 = vld [vmem:[#allocation5 + $0x8] sm:$0xff]  ;;  %s361_s2 = smov [#allocation8]  }
  0x38   :  { %v60_v2 = vld [vmem:[#allocation5 + $0x10] sm:$0xff]  ;;  %v236_v3 = vpack.c.bf16 %v59_v1, %v58_v0  ;;  %v61_v4 = vld [vmem:[#allocation5 + $0x18] sm:$0xff]  ;;  %v54_v5 = vld [vmem:[#allocation2] sm:$0xff]  ;;  %s196_s22 = sshll.u32 %s361_s2, 4  ;;  %s197_s22 = int_to_ptr.vmem [resolvable:$true] %s196_s22 }
  0x39   :  { %v56_v6 = vld [vmem:[#allocation2 + $0x10] sm:$0xff]  ;;  %v240_v7 = vpack.c.bf16 %v61_v4, %v60_v2  ;;  %230 = vmatprep.mubr.msk.f32.mxu0 %vm69_vm0, %v54_v5  ;;  %v55_v8 = vld [vmem:[#allocation2 + $0x8] sm:$0xff]  ;;  %v57_v9 = vld [vmem:[#allocation2 + $0x18] sm:$0xff]  ;;  %s328_s23 = scalar_lea.vmem %s197_s22, 512  ;;  %p333_p11 = scmp.lt.s32.totalorder %s197_s22, %s197_s22 }
  0x3a   :  { %233 = vmatprep.mubr.msk.f32.mxu1 %vm69_vm0, %v56_v6  ;;  %237 = vmatprep.subr.bf16.mxu0 %v236_v3  ;;  %v209_v10 = vld [vmem:[#allocation7] ss:$0 sm:$0xff]  ;;  %p329_p10 = scmp.ne.s32.totalorder %s197_s22, %s328_s23  ;;  %p334_p12 = scmp.lt.s32.totalorder %s328_s23, %s328_s23 }
  0x3b   :  { %244 = vmatprep.subr.bf16.mxu1 %v236_v3  ;;  %239 = vmatpush3.bf16.msra.mxu0 %v236_v3 }
  0x3c   :  { %246 = vmatpush3.bf16.msra.mxu1 %v236_v3  ;;  %241 = vmatprep.subr.bf16.mxu0 %v240_v7  ;;  %p335_p13 = por %p334_p12, %p333_p11 }
  0x3d   :  { %245 = vmatprep.subr.bf16.mxu1 %v240_v7 }
  0x3e   :  { %p336_p0 = pnand %p335_p13, %p329_p10 }
  0x3f   :  { %243 = vmatpush3.bf16.msra.mxu0 %v240_v7 }
  0x40   :  { %247 = vmatpush3.bf16.msra.mxu1 %v240_v7 }
  0x42   :  { %231 = vmatmul.mubr.msk.f32.vlgmr.msra.gmra.mrb[0].mxu0 %vm69_vm0, %v55_v8 }
  0x43   :  { %234 = vmatmul.mubr.msk.f32.vlgmr.msra.gmra.mrb[0].mxu1 %vm69_vm0, %v57_v9 }
 0x115   :  { %v232_v11 = vpop.f32.mrb[0].mxu0 }
 0x116   :  { %v235_v12 = vpop.f32.mrb[0].mxu1  ;;  %v154_v13 = vadd.f32 %v232_v11, %v209_v10  ;;  %v148_v15 = vpop.f32.mrb[1].mxu0 }
 0x117   :  { %v164_v14 = vadd.f32 %v235_v12, %v209_v10  ;;  %v158_v16 = vpop.f32.mrb[1].mxu1  ;;  %v149_v17 = vadd.f32 %v209_v10, %v148_v15 }
 0x118   :  { %v159_v18 = vadd.f32 %v209_v10, %v158_v16  ;;  %v172_v19 = vmul.f32 0.70710677, %v154_v13  ;;  %v168_v25 = vmul.f32 0.5, %v154_v13 }
 0x119   :  { %v174_v20 = vmul.f32 0.70710677, %v164_v14  ;;  %v171_v21 = vmul.f32 0.70710677, %v149_v17  ;;  %v170_v28 = vmul.f32 0.5, %v164_v14  ;;  %v167_v32 = vmul.f32 0.5, %v149_v17 }
 0x11a   :  { %v173_v22 = vmul.f32 0.70710677, %v159_v18  ;;  %254 = verf.f32 %v172_v19  ;;  %v169_v35 = vmul.f32 0.5, %v159_v18 }
 0x11b   :  { %256 = verf.f32 %v174_v20 }
 0x11c   :  { %258 = verf.f32 %v171_v21 }
 0x11d   :  { %260 = verf.f32 %v173_v22 }
 0x124   :  { %v255_v23 = vpop.eup %254 }
 0x125   :  { %v257_v24 = vpop.eup %256  ;;  %v180_v26 = vadd.f32 1.0, %v255_v23 }
 0x126   :  { %v259_v27 = vpop.eup %258  ;;  %v182_v29 = vadd.f32 1.0, %v257_v24 }
 0x127   :  { %v261_v30 = vpop.eup %260  ;;  %v184_v31 = vmul.f32 %v180_v26, %v168_v25  ;;  %v179_v33 = vadd.f32 1.0, %v259_v27 }
 0x128   :  { %v186_v34 = vmul.f32 %v182_v29, %v170_v28  ;;  %v181_v36 = vadd.f32 1.0, %v261_v30 }
 0x129   :  { %188 = vst [vmem:[#allocation8 + $0x8] sm:$0xff] %v184_v31  ;;  %v183_v37 = vmul.f32 %v179_v33, %v167_v32 }
 0x12a   :  { %190 = vst [vmem:[#allocation8 + $0x18] sm:$0xff] %v186_v34  ;;  %v185_v38 = vmul.f32 %v181_v36, %v169_v35 }
 0x12b   :  { %187 = vst [vmem:[#allocation8] sm:$0xff] %v183_v37 }
 0x12c   :  { %189 = vst [vmem:[#allocation8 + $0x10] sm:$0xff] %v185_v38 }
 0x12d   :  { %339 = shalt.err (!%p336_p0)
}
 0x12e   :  { %s340_s28 = scalar_lea.hbm %s453_s3, 512 }
 0x12f   :  { %p341_p1 = scmp.ne.s32.totalorder %s453_s3, %s340_s28  ;;  %p344_p2 = scmp.lt.u32.totalorder %s340_s28, %s453_s3 }
 0x131   :  { %p346_p3 = pnand %p344_p2, %p341_p1 }
 0x133   :  { %349 = shalt.err (!%p346_p3)
}
 0x134   :  { %202 = dma.vmem_to_hbm [thread:$0]  %s197_s22, 512, %s453_s3, [#allocation4], %s358_s24, %s358_s24, %s359_s25  }
 0x135   :  { %354 = dma.done.wait [#allocation4], 512  }
 0x136   :  { %355 = vsyncadd [#allocation4], 4294966784 }
 0x137   :  { %206 = vsyncpa [#allocation3], 1 }
 0x138   :  { %207 = vsyncpa [#allocation6], 1 }
 0x139   :  { %208 = vsyncpa [#allocation4], 1 }

</bundles_post_ra>
